<compile_context>
chip_gen: v7x
topology: tpu7x:2x2x1
jax: 0.10.0
libtpu: 0.0.40
codegen_flags: <defaults>
</compile_context>

<pallas_src>
import functools

import jax
import jax.numpy as jnp
from jax import lax
from jax.experimental import pallas as pl
from jax.experimental.pallas import tpu as pltpu

LN_EPS = 1e-6


def _t5_layer_norm_kernel(x_ref, w_ref, o_ref, *, eps):
    # x_ref: [TILE_M, H], w_ref: [1, H], o_ref: [TILE_M, H]
    x = x_ref[...].astype(jnp.float32)                       # f32 math as in PyTorch
    var = jnp.mean(x * x, axis=-1, keepdims=True)            # XLU cross-lane reduce
    inv = lax.rsqrt(var + eps)                               # EUP rsqrt (own VLIW slot)
    o_ref[...] = (w_ref[...] * (x * inv)).astype(o_ref.dtype)


def t5_layer_norm(x, weight, *, eps=LN_EPS, tile_m=256):
    """x: [..., H]; weight: [H]  ->  [..., H] (same dtype as x)."""
    orig_shape = x.shape
    H = orig_shape[-1]
    R = 1
    for d in orig_shape[:-1]:
        R *= d

    x2 = x.reshape(R, H)
    w2 = weight.reshape(1, H)

    # Row tile: multiple of 8 sublanes, clamped to the (padded) row count.
    tm = max(8, min(tile_m, pl.cdiv(R, 8) * 8))
    tm = (tm // 8) * 8
    r_pad = pl.cdiv(R, tm) * tm
    if r_pad != R:
        # Zero rows are harmless: var=0 -> finite rsqrt, 0 output, sliced off below.
        x2 = jnp.pad(x2, ((0, r_pad - R), (0, 0)))

    grid = (r_pad // tm,)

    # Double-buffered input + output tiles (budget at f32 width) + weight + headroom.
    work_bytes = (2 * 2 * tm * H + 2 * H) * 4
    vmem_bytes = int(min(work_bytes + (8 << 20), 48 << 20))  # stay under v7x 64 MiB

    kernel = functools.partial(_t5_layer_norm_kernel, eps=eps)

    out = pl.pallas_call(
        kernel,
        out_shape=jax.ShapeDtypeStruct((r_pad, H), x.dtype),
        grid_spec=pltpu.PrefetchScalarGridSpec(
            num_scalar_prefetch=0,
            grid=grid,
            in_specs=[
                pl.BlockSpec((tm, H), lambda i: (i, 0)),   # row tile of x
                pl.BlockSpec((1, H), lambda i: (0, 0)),    # weight (resident)
            ],
            out_specs=pl.BlockSpec((tm, H), lambda i: (i, 0)),
        ),
        compiler_params=pltpu.CompilerParams(
            dimension_semantics=("parallel",),
            vmem_limit_bytes=vmem_bytes,
        ),
    )(x2, w2)

    if r_pad != R:
        out = out[:R]
    return out.reshape(orig_shape)


def t5_layer_norm_ref(x, weight, eps=LN_EPS):
    """Pure-JAX mirror of the PyTorch T5LayerNorm.forward."""
    var = jnp.mean(x.astype(jnp.float32) ** 2, axis=-1, keepdims=True)
    xn = x / jnp.sqrt(var + eps)
    return (weight * xn).astype(x.dtype)


if __name__ == "__main__":
    # Small but representative config: batch=2, seq=300 (exercises the
    # row-padding path: 600 rows -> padded to 768 with TILE_M=256),
    # hidden=256 (lane-dense, multiple of 128).
    B, S, H = 2, 300, 256

    key = jax.random.PRNGKey(0)
    k_x, k_w = jax.random.split(key)

    x = jax.random.normal(k_x, (B, S, H), dtype=jnp.float32)
    weight = 1.0 + 0.02 * jax.random.normal(k_w, (H,), dtype=jnp.float32)

    out = t5_layer_norm(x, weight)
    out = jax.block_until_ready(out)

    ref = t5_layer_norm_ref(x, weight)
    assert out.shape == (B, S, H), out.shape
    assert jnp.allclose(out, ref, atol=1e-5, rtol=1e-5), "mismatch vs reference"

    print("KERNEL_OK")
</pallas_src>

<mosaic_0001>
module attributes {stable_mosaic.version = 11 : i64} {
  func.func @_t5_layer_norm_kernel(%arg0: i32, %arg1: memref<256x256xf32, #tpu.memory_space<vmem>>, %arg2: memref<1x256xf32, #tpu.memory_space<vmem>>, %arg3: memref<256x256xf32, #tpu.memory_space<vmem>>) attributes {dimension_semantics = [#tpu.dimension_semantics<parallel>], iteration_bounds = array<i64: 3>, scalar_prefetch = 0 : i64, scratch_operands = 0 : i64, tpu.core_type = #tpu.core_type<tc>, window_params = [{transform_indices = @transform_0, window_bounds = array<i64: 256, 256>}, {pipeline_mode = #tpu.pipeline_mode<synchronous>, transform_indices = @transform_1, window_bounds = array<i64: 1, 256>}, {transform_indices = @transform_2, window_bounds = array<i64: 256, 256>}]} {
    %c0 = arith.constant 0 : index
    %c0_0 = arith.constant 0 : index
    %0 = vector.load %arg1[%c0, %c0_0] : memref<256x256xf32, #tpu.memory_space<vmem>>, vector<256x256xf32>
    %1 = arith.mulf %0, %0 : vector<256x256xf32>
    %cst = arith.constant dense<0.000000e+00> : vector<256xf32>
    %2 = vector.multi_reduction <add>, %1, %cst [1] : vector<256x256xf32> to vector<256xf32>
    %3 = vector.shape_cast %2 : vector<256xf32> to vector<256x1xf32>
    %cst_1 = arith.constant 2.560000e+02 : f32
    %4 = vector.broadcast %cst_1 : f32 to vector<256x1xf32>
    %5 = arith.divf %3, %4 : vector<256x1xf32>
    %cst_2 = arith.constant 9.99999997E-7 : f32
    %6 = vector.broadcast %cst_2 : f32 to vector<256x1xf32>
    %7 = arith.addf %5, %6 : vector<256x1xf32>
    %8 = math.rsqrt %7 : vector<256x1xf32>
    %c0_3 = arith.constant 0 : index
    %c0_4 = arith.constant 0 : index
    %9 = vector.load %arg2[%c0_3, %c0_4] : memref<1x256xf32, #tpu.memory_space<vmem>>, vector<1x256xf32>
    %10 = vector.broadcast %8 : vector<256x1xf32> to vector<256x256xf32>
    %11 = arith.mulf %0, %10 : vector<256x256xf32>
    %12 = vector.broadcast %9 : vector<1x256xf32> to vector<256x256xf32>
    %13 = arith.mulf %12, %11 : vector<256x256xf32>
    %c0_5 = arith.constant 0 : index
    %c0_6 = arith.constant 0 : index
    %14 = vector.load %arg3[%c0_5, %c0_6] : memref<256x256xf32, #tpu.memory_space<vmem>>, vector<256x256xf32>
    tpu.vector_store %arg3[%c0_5, %c0_6], %13 {strides = array<i32>} : memref<256x256xf32, #tpu.memory_space<vmem>>, vector<256x256xf32>,
    return
  }
  func.func @transform_0(%arg0: i32) -> (i32, i32) {
    %c0_i32 = arith.constant 0 : i32
    %c0_i32_0 = arith.constant 0 : i32
    return %arg0, %c0_i32 : i32, i32
  }
  func.func @transform_1(%arg0: i32) -> (i32, i32) {
    %c0_i32 = arith.constant 0 : i32
    %c0_i32_0 = arith.constant 0 : i32
    %c0_i32_1 = arith.constant 0 : i32
    return %c0_i32, %c0_i32_0 : i32, i32
  }
  func.func @transform_2(%arg0: i32) -> (i32, i32) {
    %c0_i32 = arith.constant 0 : i32
    %c0_i32_0 = arith.constant 0 : i32
    return %arg0, %c0_i32 : i32, i32
  }
}

</mosaic_0001>

<bundles_post_ra>
// kernel: tpu_custom_call.1
= control target key start
LH: loop header
LB: loop body
LE: loop exit
PB: predicated region body
PF: predicated region fallthrough
CT: control target
= control target key end

     0   :  { %7 = vsyncpa [#allocation3], 0  ;;  %s1719_s0 = inlined_call_operand.hbm [shape: f32[768,256], index: 0, kind: input, shape index: {}]   ;;  %s1720_s1 = inlined_call_operand.vmem [shape: f32[1,256], index: 1, kind: input, shape index: {}]   ;;  %s1721_s2 = inlined_call_operand.hbm [shape: f32[768,256], index: 2, kind: output, shape index: {}]  }
   0x1   :  { %9 = vsyncpa [#allocation3 + $0x1], 0 }
   0x2   :  { %10 = vsyncpa [#allocation4], 0 }
   0x3   :  { %12 = vsyncpa [#allocation4 + $0x1], 0  ;;  %s1031_s9 = smov 0   ;;  %s1033_s10 = smov 0  }
   0x4   :  { %s1035_s11 = smov 0   ;;  %s1037_s12 = smov 0  }
   0x5 LB: > { %s1052_s13 = sadd.s32 4294967295, %s1008_s12   ;;  %s778_s14 = sadd.s32 4294967294, %s1008_s12   ;;  %s1008_s12 = sphi %s1037_s12, %s1793_s12   ;;  %s1004_s11 = sphi %s1035_s11, %s1792_s11   ;;  %s1000_s10 = sphi %s1033_s10, %s1791_s10   ;;  %s996_s9 = sphi %s1031_s9, %s1790_s9  }
   0x6   : > { %s1056_s15 = sadd.s32 1, %s1008_s12   ;;  %s25_s16 = sadd.s32 1, %s1004_s11 }
   0x7   : > { %s22_s17 = ssub.s32 %s1008_s12, %s1056_s15  ;;  %p32_p0 = scmp.ne.s32.totalorder %s1004_s11, %s1000_s10 }
   0x8   : > { %p23_p1 = scmp.eq.s32.totalorder %s22_s17, 0  ;;  %p33_p2 = scmp.eq.s32.totalorder %s1008_s12, 0 }
   0x9   : > { %p38_p3 = scmp.ne.s32.totalorder %s1000_s10, %s996_s9  ;;  %p39_p4 = scmp.eq.s32.totalorder %s1052_s13, 0 }
   0xa   : > { %s1068_s18 = scalar_select %p23_p1, %s1004_s11, %s25_s16  }
   0xb   : > { %p1070_p5 = por %p33_p2, %p32_p0  ;;  %p1074_p6 = por %p39_p4, %p38_p3 }
   0xc   : > { %p83_p7 = scmp.eq.s32.totalorder %s1052_s13, 2  ;;  %p89_p8 = scmp.eq.s32.totalorder %s778_s14, 2 }
   0xd   : > { %p810_p9 = scmp.lt.s32.totalorder %s1008_s12, 3  ;;  %s112_s23 = sand.u32 1, %s1004_s11  }
   0xe   : > { %p1080_p10 = por %p83_p7, %p32_p0  ;;  %p1084_p11 = por %p89_p8, %p38_p3 }
   0xf   : > { %s795_s24 = sshll.u32 %s1008_s12, 13  ;;  %s781_s25 = sshll.u32 %s112_s23, 9 }
  0x10   : > { %s1745_s21 = scalar_select %p1080_p10, 1, 0 }
  0x11   : > { %s1746_s22 = scalar_select %p1084_p11, 1, 0 }
  0x12   : > { %s1093_s28 = scalar_lea.hbm %s1719_s0, %s795_s24  ;;  %s116_s29 = scalar_lea.vmem [#allocation2], %s781_s25 }
  0x13   : > { %s124_s30 = sshll.u32 %s116_s29, 4  ;;  %p1097_p12 = pnand %p810_p9, %p1070_p5  ;;  %s1101_s30 = int_to_ptr.vmem [resolvable:$true] %s124_s30 }
  0x14   : > { %s1103_s4 = scalar_lea.sflag [#allocation3], %s112_s23  ;;  %s912_s5 = scalar_lea.hbm %s1093_s28, 8192 }
  0x15   : > { %p913_p13 = scmp.ne.s32.totalorder %s1093_s28, %s912_s5  ;;  %p914_p0 = pneg %p1097_p12 }
  0x16   : > { %s917_s8 = scalar_lea.hbm %s1719_s0, 24576  ;;  %p918_p3 = scmp.lt.u32.totalorder %s1093_s28, %s1719_s0 }
  0x17   : > { %p915_p1 = pnand %p914_p0, %p913_p13  ;;  %p919_p4 = scmp.lt.u32.totalorder %s917_s8, %s912_s5 }
  0x18   : > { %p921_p7 = scmp.lt.u32.totalorder %s912_s5, %s1093_s28 }
  0x19   : > { %p916_p2 = pneg %p915_p1  ;;  %p920_p5 = por %p919_p4, %p918_p3 }
  0x1b   : > { %p922_p8 = por %p921_p7, %p920_p5 }
  0x1d   : > { %p923_p9 = pnand %p922_p8, %p916_p2 }
  0x1f   : > { %926 = shalt.err (!%p923_p9)
}
  0x20   : > { %s927_s17 = scalar_lea.vmem %s1101_s30, 8192  ;;  %s1010_s19 = smov [#allocation2]  }
  0x21   : > { %p928_p13 = scmp.ne.s32.totalorder %s1101_s30, %s927_s17  ;;  %s932_s23 = sshll.u32 %s1010_s19, 4  ;;  %s933_s23 = int_to_ptr.vmem [resolvable:$false] %s932_s23 }
  0x22   : > { %s934_s24 = scalar_lea.vmem %s933_s23, 16384  ;;  %p935_p10 = scmp.lt.s32.totalorder %s1101_s30, %s933_s23 }
  0x23   : > { %p930_p1 = pnand %p928_p13, %p914_p0  ;;  %p936_p3 = scmp.lt.s32.totalorder %s934_s24, %s927_s17 }
  0x25   : > { %p931_p11 = pneg %p930_p1  ;;  %p937_p4 = por %p936_p3, %p935_p10 }
  0x27   : > { %p938_p5 = pnand %p937_p4, %p931_p11 }
  0x29   : > { %941 = shalt.err (!%p938_p5)
}
  0x2a   : > { %s1011_s25 = smov 256   ;;  %s1012_s26 = smov 16  }
  0x2b   : > { %805 = dma.hbm_to_vmem [thread:$0]  (!%p1097_p12), %s1093_s28, 8192, %s1101_s30, %s1103_s4, %s1011_s25, %s1011_s25, %s1012_s26  }
  0x2c   : > { %p785_p0 = scmp.ge.s32.totalorder %s1008_s12, 1  ;;  %p132_p2 = scmp.lt.s32.totalorder %s1008_s12, 4 }
  0x2e   : > { %p133_p7 = pnand %p785_p0, %p132_p2 }
  0x30   : > { %136 = sbr.rel (%p133_p7) target bundleno = 301 (0x12d), region = 28 }
  0x37   : > { %s1134_s27 = sand.u32 1, %s1000_s10  }
  0x38   : > { %s786_s29 = sshll.u32 %s1134_s27, 9  ;;  %s139_s5 = scalar_lea.sflag [#allocation3], %s1134_s27 }
  0x39   : > { %s1140_s6 = scalar_lea.vmem [#allocation2], %s786_s29 }
  0x3a   : > { %987 = dma.done.wait (%p1074_p6), %s139_s5, 8192  }
  0x3b   : > { %989 = vsyncadd (%p1074_p6), %s139_s5, 4294959104  ;;  %v1147_v0 = vld [vmem:[%s1140_s6 + $0x20] sm:$0xff]  ;;  %v1150_v1 = vld [vmem:[%s1140_s6 + $0x28] sm:$0xff]  ;;  %s1483_s30 = scalar_lea.vmem [#allocation5], %s786_s29  ;;  %s797_s3 = sshll.u32 %s1052_s13, 13 }
  0x3c   : > { %v1153_v2 = vld [vmem:[%s1140_s6] sm:$0xff]  ;;  %v233_v3 = vmul.f32 %v1147_v0, %v1147_v0  ;;  %v234_v4 = vmul.f32 %v1150_v1, %v1150_v1  ;;  %v1160_v5 = vld [vmem:[%s1140_s6 + $0x8] sm:$0xff]  ;;  %v1165_v7 = vld [vmem:[%s1140_s6 + $0x30] sm:$0xff]  ;;  %s705_s4 = sshll.u32 %s1483_s30, 4  ;;  %s1668_s8 = scalar_lea.hbm %s1721_s2, %s797_s3  ;;  %s1670_s4 = int_to_ptr.vmem [resolvable:$true] %s705_s4 }
  0x3d   : > { %v229_v6 = vmul.f32 %v1153_v2, %v1153_v2  ;;  %v1168_v8 = vld [vmem:[%s1140_s6 + $0x38] sm:$0xff]  ;;  %v230_v9 = vmul.f32 %v1160_v5, %v1160_v5  ;;  %v235_v10 = vmul.f32 %v1165_v7, %v1165_v7  ;;  %v1177_v12 = vld [vmem:[%s1140_s6 + $0x10] sm:$0xff]  ;;  %v1193_v19 = vld [vmem:[%s1140_s6 + $0x40] sm:$0xff]  ;;  %s691_s14 = scalar_lea.sflag [#allocation4], %s1134_s27  ;;  %s942_s16 = scalar_lea.vmem %s1670_s4, 8192 }
  0x3e   : > { %v236_v11 = vmul.f32 %v1168_v8, %v1168_v8  ;;  %v1180_v13 = vld [vmem:[%s1140_s6 + $0x18] sm:$0xff]  ;;  %v1183_v14 = vld [vmem:[%s1140_s6 + $0x50] sm:$0xff]  ;;  %v299_v15 = vadd.f32 %v234_v4, %v233_v3  ;;  %v231_v16 = vmul.f32 %v1177_v12, %v1177_v12  ;;  %v1196_v20 = vld [vmem:[%s1140_s6 + $0x48] sm:$0xff]  ;;  %v237_v26 = vmul.f32 %v1193_v19, %v1193_v19  ;;  %p943_p6 = scmp.ne.s32.totalorder %s1670_s4, %s942_s16  ;;  %p1788_p10 = scmp.ne.s32.totalorder %s1745_s21, 0 }
  0x3f   : > { %v232_v17 = vmul.f32 %v1180_v13, %v1180_v13  ;;  %v1190_v18 = vld [vmem:[%s1140_s6 + $0x58] sm:$0xff]  ;;  %v293_v21 = vadd.f32 %v230_v9, %v229_v6  ;;  %v239_v23 = vmul.f32 %v1183_v14, %v1183_v14  ;;  %v238_v27 = vmul.f32 %v1196_v20, %v1196_v20  ;;  %v1207_v28 = vld [vmem:[%s1140_s6 + $0x70] sm:$0xff]  ;;  %v1213_v30 = vld [vmem:[%s1140_s6 + $0x60] sm:$0xff]  ;;  %s1013_s17 = smov [#allocation5]  }
  0x40   : > { %300 = vadd.xlane.f32.xlu1 %v299_v15  ;;  %v302_v22 = vadd.f32 %v236_v11, %v235_v10  ;;  %v240_v24 = vmul.f32 %v1190_v18, %v1190_v18  ;;  %v1210_v29 = vld [vmem:[%s1140_s6 + $0x78] sm:$0xff]  ;;  %v1216_v31 = vld [vmem:[%s1140_s6 + $0x68] sm:$0xff]  ;;  %v243_v33 = vmul.f32 %v1207_v28, %v1207_v28  ;;  %v241_v36 = vmul.f32 %v1213_v30, %v1213_v30  ;;  %v1227_v38 = vld [vmem:[%s1140_s6 + $0x90] sm:$0xff]  ;;  %p944_p11 = pnand %p943_p6, %p1788_p10  ;;  %s946_s19 = sshll.u32 %s1013_s17, 4  ;;  %s947_s19 = int_to_ptr.vmem [resolvable:$false] %s946_s19 }
  0x41   : > { %294 = vadd.xlane.f32.xlu0 %v293_v21  ;;  %v296_v25 = vadd.f32 %v232_v17, %v231_v16  ;;  %v244_v34 = vmul.f32 %v1210_v29, %v1210_v29  ;;  %v305_v35 = vadd.f32 %v238_v27, %v237_v26  ;;  %v242_v37 = vmul.f32 %v1216_v31, %v1216_v31  ;;  %v1230_v39 = vld [vmem:[%s1140_s6 + $0x98] sm:$0xff]  ;;  %v1233_v40 = vld [vmem:[%s1140_s6 + $0x80] sm:$0xff]  ;;  %v1236_v41 = vld [vmem:[%s1140_s6 + $0x88] sm:$0xff]  ;;  %s948_s23 = scalar_lea.vmem %s947_s19, 16384  ;;  %p949_p8 = scmp.lt.s32.totalorder %s1670_s4, %s947_s19 }
  0x42   : > { %v308_v32 = vadd.f32 %v240_v24, %v239_v23  ;;  %v247_v43 = vmul.f32 %v1227_v38, %v1227_v38  ;;  %v248_v44 = vmul.f32 %v1230_v39, %v1230_v39  ;;  %v245_v46 = vmul.f32 %v1233_v40, %v1233_v40  ;;  %v1247_v48 = vld [vmem:[%s1140_s6 + $0xb0] sm:$0xff]  ;;  %v1250_v49 = vld [vmem:[%s1140_s6 + $0xb8] sm:$0xff]  ;;  %v1253_v50 = vld [vmem:[%s1140_s6 + $0xa0] sm:$0xff]  ;;  %p945_p12 = pneg %p944_p11  ;;  %p950_p9 = scmp.lt.s32.totalorder %s948_s23, %s942_s16 }
  0x43   : > { %v314_v42 = vadd.f32 %v244_v34, %v243_v33  ;;  %v311_v45 = vadd.f32 %v242_v37, %v241_v36  ;;  %v246_v47 = vmul.f32 %v1236_v41, %v1236_v41  ;;  %v1256_v51 = vld [vmem:[%s1140_s6 + $0xa8] sm:$0xff]  ;;  %v251_v53 = vmul.f32 %v1247_v48, %v1247_v48  ;;  %v1267_v58 = vld [vmem:[%s1140_s6 + $0xd0] sm:$0xff]  ;;  %v1270_v59 = vld [vmem:[%s1140_s6 + $0xd8] sm:$0xff] }
  0x44   : > { %303 = vadd.xlane.f32.xlu1 %v302_v22  ;;  %v320_v52 = vadd.f32 %v248_v44, %v247_v43  ;;  %v252_v54 = vmul.f32 %v1250_v49, %v1250_v49  ;;  %v249_v56 = vmul.f32 %v1253_v50, %v1253_v50  ;;  %v250_v57 = vmul.f32 %v1256_v51, %v1256_v51  ;;  %v1273_v60 = vld [vmem:[%s1140_s6 + $0xc0] sm:$0xff]  ;;  %v1276_v61 = vld [vmem:[%s1140_s6 + $0xc8] sm:$0xff]  ;;  %v1287_v10 = vld [vmem:[%s1140_s6 + $0xf0] sm:$0xff]  ;;  %p951_p13 = por %p950_p9, %p949_p8 }
  0x45   : > { %297 = vadd.xlane.f32.xlu0 %v296_v25  ;;  %v317_v55 = vadd.f32 %v246_v47, %v245_v46  ;;  %v255_v63 = vmul.f32 %v1267_v58, %v1267_v58  ;;  %v256_v3 = vmul.f32 %v1270_v59, %v1270_v59  ;;  %v253_v6 = vmul.f32 %v1273_v60, %v1273_v60  ;;  %v1290_v11 = vld [vmem:[%s1140_s6 + $0xf8] sm:$0xff]  ;;  %v1293_v15 = vld [vmem:[%s1140_s6 + $0xe0] sm:$0xff]  ;;  %v1296_v16 = vld [vmem:[%s1140_s6 + $0xe8] sm:$0xff] }
  0x46   : > { %v326_v62 = vadd.f32 %v252_v54, %v251_v53  ;;  %v323_v4 = vadd.f32 %v250_v57, %v249_v56  ;;  %v254_v9 = vmul.f32 %v1276_v61, %v1276_v61  ;;  %v259_v21 = vmul.f32 %v1287_v10, %v1287_v10  ;;  %v1307_v26 = vld [vmem:[%s1140_s6 + $0x110] sm:$0xff]  ;;  %v1310_v27 = vld [vmem:[%s1140_s6 + $0x118] sm:$0xff]  ;;  %v1316_v33 = vld [vmem:[%s1140_s6 + $0x108] sm:$0xff]  ;;  %p952_p1 = pnand %p951_p13, %p945_p12 }
  0x47   : > { %v332_v17 = vadd.f32 %v256_v3, %v255_v63  ;;  %v260_v22 = vmul.f32 %v1290_v11, %v1290_v11  ;;  %v257_v24 = vmul.f32 %v1293_v15, %v1293_v15  ;;  %v258_v25 = vmul.f32 %v1296_v16, %v1296_v16  ;;  %v1327_v44 = vld [vmem:[%s1140_s6 + $0x130] sm:$0xff]  ;;  %v1333_v46 = vld [vmem:[%s1140_s6 + $0x120] sm:$0xff]  ;;  %v1336_v47 = vld [vmem:[%s1140_s6 + $0x128] sm:$0xff] }
  0x48   : > { %309 = vadd.xlane.f32.xlu1 %v308_v32  ;;  %v329_v23 = vadd.f32 %v254_v9, %v253_v6  ;;  %v1313_v32 = vld [vmem:[%s1140_s6 + $0x100] sm:$0xff]  ;;  %v264_v36 = vmul.f32 %v1310_v27, %v1310_v27  ;;  %v262_v43 = vmul.f32 %v1316_v33, %v1316_v33  ;;  %v267_v53 = vmul.f32 %v1327_v44, %v1327_v44  ;;  %v1350_v63 = vld [vmem:[%s1140_s6 + $0x158] sm:$0xff] }
  0x49   : > { %306 = vadd.xlane.f32.xlu0 %v305_v35  ;;  %v338_v34 = vadd.f32 %v260_v22, %v259_v21  ;;  %v263_v35 = vmul.f32 %v1307_v26, %v1307_v26  ;;  %v335_v37 = vadd.f32 %v258_v25, %v257_v24  ;;  %v265_v56 = vmul.f32 %v1333_v46, %v1333_v46  ;;  %v1353_v3 = vld [vmem:[%s1140_s6 + $0x140] sm:$0xff]  ;;  %v1367_v24 = vld [vmem:[%s1140_s6 + $0x170] sm:$0xff]  ;;  %v1370_v25 = vld [vmem:[%s1140_s6 + $0x178] sm:$0xff] }
  0x4a   : > { %v266_v57 = vmul.f32 %v1336_v47, %v1336_v47  ;;  %v269_v22 = vmul.f32 %v1353_v3, %v1353_v3  ;;  %1748 = vst [vmem:[#allocation8_spill] sm:$0xff] %v1367_v24  ;;  %1749 = vst [vmem:[#allocation9_spill] sm:$0xff] %v1370_v25 }
  0x4c   : > { %315 = vadd.xlane.f32.xlu1 %v314_v42  ;;  %v261_v42 = vmul.f32 %v1313_v32, %v1313_v32  ;;  %v347_v21 = vadd.f32 %v266_v57, %v265_v56  ;;  %v1393_v56 = vld [vmem:[%s1140_s6 + $0x180] sm:$0xff]  ;;  %v1396_v57 = vld [vmem:[%s1140_s6 + $0x188] sm:$0xff] }
  0x4d   : > { %312 = vadd.xlane.f32.xlu0 %v311_v45  ;;  %v1330_v45 = vld [vmem:[%s1140_s6 + $0x138] sm:$0xff]  ;;  %1754 = vst [vmem:[#allocation14_spill] sm:$0xff] %v1393_v56  ;;  %1755 = vst [vmem:[#allocation15_spill] sm:$0xff] %v1396_v57 }
  0x4e   : > { %v268_v54 = vmul.f32 %v1330_v45, %v1330_v45 }
  0x50   : > { %321 = vadd.xlane.f32.xlu1 %v320_v52  ;;  %v344_v52 = vadd.f32 %v264_v36, %v263_v35  ;;  %v350_v6 = vadd.f32 %v268_v54, %v267_v53  ;;  %v1376_v35 = vld [vmem:[%s1140_s6 + $0x168] sm:$0xff]  ;;  %v1387_v54 = vld [vmem:[%s1140_s6 + $0x190] sm:$0xff] }
  0x51   : > { %318 = vadd.xlane.f32.xlu0 %v317_v55  ;;  %v341_v55 = vadd.f32 %v262_v43, %v261_v42  ;;  %1751 = vst [vmem:[#allocation11_spill] sm:$0xff] %v1376_v35  ;;  %v276_v42 = vmul.f32 %v1370_v25, %v1370_v25  ;;  %v274_v53 = vmul.f32 %v1376_v35, %v1376_v35  ;;  %1752 = vst [vmem:[#allocation12_spill] sm:$0xff] %v1387_v54  ;;  %v1447_v35 = vld [vmem:[%s1140_s6 + $0x1f0] sm:$0xff] }
  0x52   : > { %1764 = vst [vmem:[#allocation24_spill] sm:$0xff] %v1447_v35 }
  0x54   : > { %327 = vadd.xlane.f32.xlu1 %v326_v62  ;;  %v1347_v62 = vld [vmem:[%s1140_s6 + $0x150] sm:$0xff] }
  0x55   : > { %324 = vadd.xlane.f32.xlu0 %v323_v4  ;;  %v1356_v4 = vld [vmem:[%s1140_s6 + $0x148] sm:$0xff]  ;;  %v271_v9 = vmul.f32 %v1347_v62, %v1347_v62 }
  0x58   : > { %333 = vadd.xlane.f32.xlu1 %v332_v17  ;;  %v272_v17 = vmul.f32 %v1350_v63, %v1350_v63 }
  0x59   : > { %330 = vadd.xlane.f32.xlu0 %v329_v23  ;;  %v270_v23 = vmul.f32 %v1356_v4, %v1356_v4 }
  0x5a   : > { %v356_v36 = vadd.f32 %v272_v17, %v271_v9  ;;  %v279_v9 = vmul.f32 %v1387_v54, %v1387_v54  ;;  %v1416_v54 = vld [vmem:[%s1140_s6 + $0x1a8] sm:$0xff] }
  0x5b   : > { %v353_v43 = vadd.f32 %v270_v23, %v269_v22  ;;  %v277_v22 = vmul.f32 %v1393_v56, %v1393_v56  ;;  %v278_v23 = vmul.f32 %v1396_v57, %v1396_v57  ;;  %1759 = vst [vmem:[#allocation19_spill] sm:$0xff] %v1416_v54 }
  0x5c   : > { %339 = vadd.xlane.f32.xlu1 %v338_v34  ;;  %v1373_v34 = vld [vmem:[%s1140_s6 + $0x160] sm:$0xff] }
  0x5d   : > { %336 = vadd.xlane.f32.xlu0 %v335_v37  ;;  %1750 = vst [vmem:[#allocation10_spill] sm:$0xff] %v1373_v34  ;;  %v275_v37 = vmul.f32 %v1367_v24, %v1367_v24  ;;  %v365_v57 = vadd.f32 %v278_v23, %v277_v22 }
  0x60   : > { %345 = vadd.xlane.f32.xlu1 %v344_v52  ;;  %v273_v52 = vmul.f32 %v1373_v34, %v1373_v34  ;;  %v1450_v34 = vld [vmem:[%s1140_s6 + $0x1f8] sm:$0xff] }
  0x61   : > { %342 = vadd.xlane.f32.xlu0 %v341_v55  ;;  %v1390_v55 = vld [vmem:[%s1140_s6 + $0x198] sm:$0xff]  ;;  %1765 = vst [vmem:[#allocation25_spill] sm:$0xff] %v1450_v34 }
  0x62   : > { %1753 = vst [vmem:[#allocation13_spill] sm:$0xff] %v1390_v55  ;;  %v280_v17 = vmul.f32 %v1390_v55, %v1390_v55  ;;  %v282_v55 = vmul.f32 %v1416_v54, %v1416_v54 }
  0x64   : > { %351 = vadd.xlane.f32.xlu1 %v350_v6  ;;  %v362_v6 = vadd.f32 %v276_v42, %v275_v37  ;;  %v1410_v37 = vld [vmem:[%s1140_s6 + $0x1b8] sm:$0xff]  ;;  %v1413_v42 = vld [vmem:[%s1140_s6 + $0x1a0] sm:$0xff] }
  0x65   : > { %348 = vadd.xlane.f32.xlu0 %v347_v21  ;;  %v359_v21 = vadd.f32 %v274_v53, %v273_v52  ;;  %1757 = vst [vmem:[#allocation17_spill] sm:$0xff] %v1410_v37  ;;  %1758 = vst [vmem:[#allocation18_spill] sm:$0xff] %v1413_v42  ;;  %v284_v53 = vmul.f32 %v1410_v37, %v1410_v37  ;;  %v281_v56 = vmul.f32 %v1413_v42, %v1413_v42 }
  0x67   : > { %v371_v42 = vadd.f32 %v282_v55, %v281_v56  ;;  %v292_v55 = vmul.f32 %v1450_v34, %v1450_v34 }
  0x68   : > { %357 = vadd.xlane.f32.xlu1 %v356_v36  ;;  %v1407_v36 = vld [vmem:[%s1140_s6 + $0x1b0] sm:$0xff] }
  0x69   : > { %354 = vadd.xlane.f32.xlu0 %v353_v43  ;;  %1756 = vst [vmem:[#allocation16_spill] sm:$0xff] %v1407_v36  ;;  %v368_v43 = vadd.f32 %v280_v17, %v279_v9  ;;  %v283_v52 = vmul.f32 %v1407_v36, %v1407_v36  ;;  %v1430_v9 = vld [vmem:[%s1140_s6 + $0x1d8] sm:$0xff]  ;;  %v1433_v17 = vld [vmem:[%s1140_s6 + $0x1c0] sm:$0xff]  ;;  %v1436_v36 = vld [vmem:[%s1140_s6 + $0x1c8] sm:$0xff] }
  0x6a   : > { %1761 = vst [vmem:[#allocation21_spill] sm:$0xff] %v1430_v9  ;;  %1762 = vst [vmem:[#allocation22_spill] sm:$0xff] %v1433_v17  ;;  %v288_v23 = vmul.f32 %v1430_v9, %v1430_v9  ;;  %v285_v54 = vmul.f32 %v1433_v17, %v1433_v17  ;;  %v286_v37 = vmul.f32 %v1436_v36, %v1436_v36 }
  0x6b   : > { %1763 = vst [vmem:[#allocation23_spill] sm:$0xff] %v1436_v36 }
  0x6c   : > { %363 = vadd.xlane.f32.xlu1 %v362_v6  ;;  %v1427_v6 = vld [vmem:[%s1140_s6 + $0x1d0] sm:$0xff]  ;;  %v377_v56 = vadd.f32 %v286_v37, %v285_v54 }
  0x6d   : > { %360 = vadd.xlane.f32.xlu0 %v359_v21  ;;  %1760 = vst [vmem:[#allocation20_spill] sm:$0xff] %v1427_v6  ;;  %v374_v21 = vadd.f32 %v284_v53, %v283_v52  ;;  %v287_v22 = vmul.f32 %v1427_v6, %v1427_v6  ;;  %v1456_v52 = vld [vmem:[%s1140_s6 + $0x1e8] sm:$0xff] }
  0x6e   : > { %1767 = vst [vmem:[#allocation27_spill] sm:$0xff] %v1456_v52  ;;  %v290_v17 = vmul.f32 %v1456_v52, %v1456_v52 }
  0x6f   : > { %v380_v53 = vadd.f32 %v288_v23, %v287_v22 }
  0x70   : > { %369 = vadd.xlane.f32.xlu1 %v368_v43  ;;  %v1453_v43 = vld [vmem:[%s1140_s6 + $0x1e0] sm:$0xff] }
  0x71   : > { %366 = vadd.xlane.f32.xlu0 %v365_v57  ;;  %1766 = vst [vmem:[#allocation26_spill] sm:$0xff] %v1453_v43  ;;  %v291_v57 = vmul.f32 %v1447_v35, %v1447_v35  ;;  %v289_v36 = vmul.f32 %v1453_v43, %v1453_v43  ;;  %v552_v35 = vlaneseq }
  0x73   : > { %v386_v9 = vadd.f32 %v292_v55, %v291_v57  ;;  %v383_v6 = vadd.f32 %v290_v17, %v289_v36  ;;  %v553_v24 = vshrl.u32 %v552_v35, 7 }
  0x74   : > { %375 = vadd.xlane.f32.xlu1 %v374_v21 }
  0x75   : > { %372 = vadd.xlane.f32.xlu0 %v371_v42  ;;  %v558_v17 = vsub.s32 1, %v553_v24 }
  0x78   : > { %381 = vadd.xlane.f32.xlu1 %v380_v53 }
  0x79   : > { %378 = vadd.xlane.f32.xlu0 %v377_v56 }
  0x7c   : > { %387 = vadd.xlane.f32.xlu1 %v386_v9  ;;  %v554_v9 = vsub.s32 0, %v553_v24 }
  0x7d   : > { %384 = vadd.xlane.f32.xlu0 %v383_v6 }
  0xcd   : > { %v301_v21 = vpop.xlane.xlu1 %300 }
  0xce   : > { %v392_v22 = vmul.f32 0.00390625, %v301_v21  ;;  %v295_v23 = vpop.xlane.xlu0 %294 }
  0xcf   : > { %v390_v25 = vmul.f32 0.00390625, %v295_v23 }
  0xd0   : > { %v424_v34 = vadd.f32 1e-06, %v392_v22 }
  0xd1   : > { %v422_v42 = vadd.f32 1e-06, %v390_v25  ;;  %v304_v54 = vpop.xlane.xlu1 %303  ;;  %v486_v25 = vld [vmem:[%s1720_s1] sm:$0x3] }
  0xd2   : > { %848 = vrsqrt.f32 %v424_v34  ;;  %v393_v37 = vmul.f32 0.00390625, %v304_v54  ;;  %v298_v43 = vpop.xlane.xlu0 %297  ;;  %v1469_v23 = vrot.slane %v486_v25, %v554_v9 }
  0xd3   : > { %850 = vrsqrt.f32 %v422_v42  ;;  %v391_v52 = vmul.f32 0.00390625, %v298_v43 }
  0xd4   : > { %v425_v53 = vadd.f32 1e-06, %v393_v37 }
  0xd5   : > { %v423_v57 = vadd.f32 1e-06, %v391_v52  ;;  %v310_v55 = vpop.xlane.xlu1 %309  ;;  %v1471_v52 = vrot.slane %v486_v25, %v558_v17 }
  0xd6   : > { %852 = vrsqrt.f32 %v425_v53  ;;  %v395_v36 = vmul.f32 0.00390625, %v310_v55  ;;  %v307_v6 = vpop.xlane.xlu0 %306 }
  0xd7   : > { %854 = vrsqrt.f32 %v423_v57  ;;  %v394_v56 = vmul.f32 0.00390625, %v307_v6 }
  0xd8   : > { %v427_v34 = vadd.f32 1e-06, %v395_v36 }
  0xd9   : > { %v426_v21 = vadd.f32 1e-06, %v394_v56  ;;  %v316_v22 = vpop.xlane.xlu1 %315 }
  0xda   : > { %856 = vrsqrt.f32 %v427_v34  ;;  %v397_v35 = vmul.f32 0.00390625, %v316_v22  ;;  %v313_v43 = vpop.xlane.xlu0 %312 }
  0xdb   : > { %858 = vrsqrt.f32 %v426_v21  ;;  %v396_v42 = vmul.f32 0.00390625, %v313_v43 }
  0xdc   : > { %v849_v54 = vpop.eup %848  ;;  %v429_v24 = vadd.f32 1e-06, %v397_v35 }
  0xdd   : > { %v851_v37 = vpop.eup %850  ;;  %v491_v53 = vmul.f32 %v849_v54, %v1147_v0  ;;  %v492_v57 = vmul.f32 %v849_v54, %v1150_v1  ;;  %v428_v55 = vadd.f32 1e-06, %v396_v42  ;;  %v322_v36 = vpop.xlane.xlu1 %321 }
  0xde   : > { %v487_v6 = vmul.f32 %v851_v37, %v1153_v2  ;;  %v488_v56 = vmul.f32 %v851_v37, %v1160_v5  ;;  %860 = vrsqrt.f32 %v429_v24  ;;  %v399_v9 = vmul.f32 0.00390625, %v322_v36  ;;  %v319_v17 = vpop.xlane.xlu0 %318 }
  0xdf   : > { %v566_v25 = vmul.f32 %v1469_v23, %v491_v53  ;;  %v567_v34 = vmul.f32 %v1471_v52, %v492_v57  ;;  %862 = vrsqrt.f32 %v428_v55  ;;  %v398_v21 = vmul.f32 0.00390625, %v319_v17 }
  0xe0   : > { %v853_v22 = vpop.eup %852  ;;  %v562_v0 = vmul.f32 %v1469_v23, %v487_v6  ;;  %v563_v1 = vmul.f32 %v1471_v52, %v488_v56  ;;  %v431_v35 = vadd.f32 1e-06, %v399_v9 }
  0xe1   : > { %v855_v43 = vpop.eup %854  ;;  %630 = vst [vmem:[%s1483_s30 + $0x20] sm:$0xff] %v566_v25  ;;  %631 = vst [vmem:[%s1483_s30 + $0x28] sm:$0xff] %v567_v34  ;;  %v493_v2 = vmul.f32 %v853_v22, %v1165_v7  ;;  %v494_v5 = vmul.f32 %v853_v22, %v1168_v8  ;;  %v430_v42 = vadd.f32 1e-06, %v398_v21  ;;  %v328_v54 = vpop.xlane.xlu1 %327 }
  0xe2   : > { %626 = vst [vmem:[%s1483_s30] sm:$0xff] %v562_v0  ;;  %627 = vst [vmem:[%s1483_s30 + $0x8] sm:$0xff] %v563_v1  ;;  %v489_v24 = vmul.f32 %v855_v43, %v1177_v12  ;;  %v490_v37 = vmul.f32 %v855_v43, %v1180_v13  ;;  %864 = vrsqrt.f32 %v431_v35  ;;  %v401_v53 = vmul.f32 0.00390625, %v328_v54  ;;  %v325_v57 = vpop.xlane.xlu0 %324 }
  0xe3   : > { %v568_v55 = vmul.f32 %v1469_v23, %v493_v2  ;;  %v569_v7 = vmul.f32 %v1471_v52, %v494_v5  ;;  %866 = vrsqrt.f32 %v430_v42  ;;  %v400_v8 = vmul.f32 0.00390625, %v325_v57 }
  0xe4   : > { %v857_v36 = vpop.eup %856  ;;  %v564_v6 = vmul.f32 %v1469_v23, %v489_v24  ;;  %v565_v56 = vmul.f32 %v1471_v52, %v490_v37  ;;  %v433_v9 = vadd.f32 1e-06, %v401_v53 }
  0xe5   : > { %v859_v12 = vpop.eup %858  ;;  %632 = vst [vmem:[%s1483_s30 + $0x30] sm:$0xff] %v568_v55  ;;  %633 = vst [vmem:[%s1483_s30 + $0x38] sm:$0xff] %v569_v7  ;;  %v497_v13 = vmul.f32 %v857_v36, %v1183_v14  ;;  %v498_v17 = vmul.f32 %v857_v36, %v1190_v18  ;;  %v432_v25 = vadd.f32 1e-06, %v400_v8  ;;  %v334_v34 = vpop.xlane.xlu1 %333 }
  0xe6   : > { %628 = vst [vmem:[%s1483_s30 + $0x10] sm:$0xff] %v564_v6  ;;  %629 = vst [vmem:[%s1483_s30 + $0x18] sm:$0xff] %v565_v56  ;;  %v495_v21 = vmul.f32 %v859_v12, %v1193_v19  ;;  %v496_v22 = vmul.f32 %v859_v12, %v1196_v20  ;;  %868 = vrsqrt.f32 %v433_v9  ;;  %v403_v0 = vmul.f32 0.00390625, %v334_v34  ;;  %v331_v1 = vpop.xlane.xlu0 %330 }
  0xe7   : > { %v572_v35 = vmul.f32 %v1469_v23, %v497_v13  ;;  %v573_v14 = vmul.f32 %v1471_v52, %v498_v17  ;;  %870 = vrsqrt.f32 %v432_v25  ;;  %v402_v18 = vmul.f32 0.00390625, %v331_v1 }
  0xe8   : > { %v861_v43 = vpop.eup %860  ;;  %v570_v2 = vmul.f32 %v1469_v23, %v495_v21  ;;  %v571_v5 = vmul.f32 %v1471_v52, %v496_v22  ;;  %v435_v42 = vadd.f32 1e-06, %v403_v0 }
  0xe9   : > { %v863_v19 = vpop.eup %862  ;;  %636 = vst [vmem:[%s1483_s30 + $0x50] sm:$0xff] %v572_v35  ;;  %637 = vst [vmem:[%s1483_s30 + $0x58] sm:$0xff] %v573_v14  ;;  %v501_v20 = vmul.f32 %v861_v43, %v1207_v28  ;;  %v502_v54 = vmul.f32 %v861_v43, %v1210_v29  ;;  %v434_v24 = vadd.f32 1e-06, %v402_v18  ;;  %v340_v37 = vpop.xlane.xlu1 %339 }
  0xea   : > { %634 = vst [vmem:[%s1483_s30 + $0x40] sm:$0xff] %v570_v2  ;;  %635 = vst [vmem:[%s1483_s30 + $0x48] sm:$0xff] %v571_v5  ;;  %v499_v53 = vmul.f32 %v863_v19, %v1213_v30  ;;  %v500_v57 = vmul.f32 %v863_v19, %v1216_v31  ;;  %872 = vrsqrt.f32 %v435_v42  ;;  %v405_v55 = vmul.f32 0.00390625, %v340_v37  ;;  %v337_v7 = vpop.xlane.xlu0 %336 }
  0xeb   : > { %v576_v8 = vmul.f32 %v1469_v23, %v501_v20  ;;  %v577_v28 = vmul.f32 %v1471_v52, %v502_v54  ;;  %874 = vrsqrt.f32 %v434_v24  ;;  %v404_v29 = vmul.f32 0.00390625, %v337_v7 }
  0xec   : > { %v865_v36 = vpop.eup %864  ;;  %v574_v6 = vmul.f32 %v1469_v23, %v499_v53  ;;  %v575_v56 = vmul.f32 %v1471_v52, %v500_v57  ;;  %v437_v9 = vadd.f32 1e-06, %v405_v55 }
  0xed   : > { %v867_v30 = vpop.eup %866  ;;  %640 = vst [vmem:[%s1483_s30 + $0x70] sm:$0xff] %v576_v8  ;;  %641 = vst [vmem:[%s1483_s30 + $0x78] sm:$0xff] %v577_v28  ;;  %v505_v31 = vmul.f32 %v865_v36, %v1227_v38  ;;  %v506_v12 = vmul.f32 %v865_v36, %v1230_v39  ;;  %v436_v13 = vadd.f32 1e-06, %v404_v29  ;;  %v346_v17 = vpop.xlane.xlu1 %345 }
  0xee   : > { %638 = vst [vmem:[%s1483_s30 + $0x60] sm:$0xff] %v574_v6  ;;  %639 = vst [vmem:[%s1483_s30 + $0x68] sm:$0xff] %v575_v56  ;;  %v503_v25 = vmul.f32 %v867_v30, %v1233_v40  ;;  %v504_v34 = vmul.f32 %v867_v30, %v1236_v41  ;;  %876 = vrsqrt.f32 %v437_v9  ;;  %v407_v21 = vmul.f32 0.00390625, %v346_v17  ;;  %v343_v22 = vpop.xlane.xlu0 %342 }
  0xef   : > { %v580_v0 = vmul.f32 %v1469_v23, %v505_v31  ;;  %v581_v38 = vmul.f32 %v1471_v52, %v506_v12  ;;  %878 = vrsqrt.f32 %v436_v13  ;;  %v406_v39 = vmul.f32 0.00390625, %v343_v22 }
  0xf0   : > { %v869_v1 = vpop.eup %868  ;;  %v578_v35 = vmul.f32 %v1469_v23, %v503_v25  ;;  %v579_v14 = vmul.f32 %v1471_v52, %v504_v34  ;;  %v439_v18 = vadd.f32 1e-06, %v407_v21 }
  0xf1   : > { %v871_v40 = vpop.eup %870  ;;  %644 = vst [vmem:[%s1483_s30 + $0x90] sm:$0xff] %v580_v0  ;;  %645 = vst [vmem:[%s1483_s30 + $0x98] sm:$0xff] %v581_v38  ;;  %v509_v41 = vmul.f32 %v869_v1, %v1247_v48  ;;  %v510_v43 = vmul.f32 %v869_v1, %v1250_v49  ;;  %v438_v2 = vadd.f32 1e-06, %v406_v39  ;;  %v352_v5 = vpop.xlane.xlu1 %351 }
  0xf2   : > { %642 = vst [vmem:[%s1483_s30 + $0x80] sm:$0xff] %v578_v35  ;;  %643 = vst [vmem:[%s1483_s30 + $0x88] sm:$0xff] %v579_v14  ;;  %v507_v42 = vmul.f32 %v871_v40, %v1253_v50  ;;  %v508_v19 = vmul.f32 %v871_v40, %v1256_v51  ;;  %880 = vrsqrt.f32 %v439_v18  ;;  %v409_v20 = vmul.f32 0.00390625, %v352_v5  ;;  %v349_v54 = vpop.xlane.xlu0 %348 }
  0xf3   : > { %v584_v24 = vmul.f32 %v1469_v23, %v509_v41  ;;  %v585_v48 = vmul.f32 %v1471_v52, %v510_v43  ;;  %882 = vrsqrt.f32 %v438_v2  ;;  %v408_v49 = vmul.f32 0.00390625, %v349_v54 }
  0xf4   : > { %v873_v37 = vpop.eup %872  ;;  %v582_v53 = vmul.f32 %v1469_v23, %v507_v42  ;;  %v583_v57 = vmul.f32 %v1471_v52, %v508_v19  ;;  %v441_v55 = vadd.f32 1e-06, %v409_v20 }
  0xf5   : > { %v875_v50 = vpop.eup %874  ;;  %648 = vst [vmem:[%s1483_s30 + $0xb0] sm:$0xff] %v584_v24  ;;  %649 = vst [vmem:[%s1483_s30 + $0xb8] sm:$0xff] %v585_v48  ;;  %v513_v51 = vmul.f32 %v873_v37, %v1267_v58  ;;  %v514_v7 = vmul.f32 %v873_v37, %v1270_v59  ;;  %v440_v8 = vadd.f32 1e-06, %v408_v49  ;;  %v358_v28 = vpop.xlane.xlu1 %357 }
  0xf6   : > { %646 = vst [vmem:[%s1483_s30 + $0xa0] sm:$0xff] %v582_v53  ;;  %647 = vst [vmem:[%s1483_s30 + $0xa8] sm:$0xff] %v583_v57  ;;  %v511_v29 = vmul.f32 %v875_v50, %v1273_v60  ;;  %v512_v36 = vmul.f32 %v875_v50, %v1276_v61  ;;  %884 = vrsqrt.f32 %v441_v55  ;;  %v411_v6 = vmul.f32 0.00390625, %v358_v28  ;;  %v355_v56 = vpop.xlane.xlu0 %354 }
  0xf7   : > { %v588_v9 = vmul.f32 %v1469_v23, %v513_v51  ;;  %v589_v58 = vmul.f32 %v1471_v52, %v514_v7  ;;  %886 = vrsqrt.f32 %v440_v8  ;;  %v410_v59 = vmul.f32 0.00390625, %v355_v56 }
  0xf8   : > { %v877_v30 = vpop.eup %876  ;;  %v586_v31 = vmul.f32 %v1469_v23, %v511_v29  ;;  %v587_v12 = vmul.f32 %v1471_v52, %v512_v36  ;;  %v443_v13 = vadd.f32 1e-06, %v411_v6 }
  0xf9   : > { %v879_v60 = vpop.eup %878  ;;  %652 = vst [vmem:[%s1483_s30 + $0xd0] sm:$0xff] %v588_v9  ;;  %653 = vst [vmem:[%s1483_s30 + $0xd8] sm:$0xff] %v589_v58  ;;  %v517_v61 = vmul.f32 %v877_v30, %v1287_v10  ;;  %v518_v17 = vmul.f32 %v877_v30, %v1290_v11  ;;  %v442_v25 = vadd.f32 1e-06, %v410_v59  ;;  %v364_v34 = vpop.xlane.xlu1 %363 }
  0xfa   : > { %650 = vst [vmem:[%s1483_s30 + $0xc0] sm:$0xff] %v586_v31  ;;  %651 = vst [vmem:[%s1483_s30 + $0xc8] sm:$0xff] %v587_v12  ;;  %v515_v21 = vmul.f32 %v879_v60, %v1293_v15  ;;  %v516_v22 = vmul.f32 %v879_v60, %v1296_v16  ;;  %888 = vrsqrt.f32 %v443_v13  ;;  %v413_v0 = vmul.f32 0.00390625, %v364_v34  ;;  %v361_v38 = vpop.xlane.xlu0 %360 }
  0xfb   : > { %v592_v39 = vmul.f32 %v1469_v23, %v517_v61  ;;  %v593_v10 = vmul.f32 %v1471_v52, %v518_v17  ;;  %890 = vrsqrt.f32 %v442_v25  ;;  %v412_v11 = vmul.f32 0.00390625, %v361_v38 }
  0xfc   : > { %v881_v1 = vpop.eup %880  ;;  %v590_v35 = vmul.f32 %v1469_v23, %v515_v21  ;;  %v591_v14 = vmul.f32 %v1471_v52, %v516_v22  ;;  %v445_v18 = vadd.f32 1e-06, %v413_v0  ;;  %v1769_v21 = vld [vmem:[#allocation9_spill] sm:$0xff] }
  0xfd   : > { %v883_v15 = vpop.eup %882  ;;  %656 = vst [vmem:[%s1483_s30 + $0xf0] sm:$0xff] %v592_v39  ;;  %657 = vst [vmem:[%s1483_s30 + $0xf8] sm:$0xff] %v593_v10  ;;  %v521_v16 = vmul.f32 %v881_v1, %v1307_v26  ;;  %v522_v40 = vmul.f32 %v881_v1, %v1310_v27  ;;  %v444_v41 = vadd.f32 1e-06, %v412_v11  ;;  %v370_v43 = vpop.xlane.xlu1 %369  ;;  %v1770_v39 = vld [vmem:[#allocation10_spill] sm:$0xff]  ;;  %v1771_v11 = vld [vmem:[#allocation11_spill] sm:$0xff] }
  0xfe   : > { %654 = vst [vmem:[%s1483_s30 + $0xe0] sm:$0xff] %v590_v35  ;;  %655 = vst [vmem:[%s1483_s30 + $0xe8] sm:$0xff] %v591_v14  ;;  %v519_v2 = vmul.f32 %v883_v15, %v1313_v32  ;;  %v520_v5 = vmul.f32 %v883_v15, %v1316_v33  ;;  %892 = vrsqrt.f32 %v445_v18  ;;  %v415_v42 = vmul.f32 0.00390625, %v370_v43  ;;  %v367_v19 = vpop.xlane.xlu0 %366 }
  0xff   : > { %v596_v20 = vmul.f32 %v1469_v23, %v521_v16  ;;  %v597_v26 = vmul.f32 %v1471_v52, %v522_v40  ;;  %894 = vrsqrt.f32 %v444_v41  ;;  %v414_v27 = vmul.f32 0.00390625, %v367_v19 }
 0x100   : > { %v885_v54 = vpop.eup %884  ;;  %v594_v24 = vmul.f32 %v1469_v23, %v519_v2  ;;  %v595_v48 = vmul.f32 %v1471_v52, %v520_v5  ;;  %v447_v49 = vadd.f32 1e-06, %v415_v42  ;;  %v1772_v42 = vld [vmem:[#allocation12_spill] sm:$0xff] }
 0x101   : > { %v887_v32 = vpop.eup %886  ;;  %660 = vst [vmem:[%s1483_s30 + $0x110] sm:$0xff] %v596_v20  ;;  %661 = vst [vmem:[%s1483_s30 + $0x118] sm:$0xff] %v597_v26  ;;  %v525_v33 = vmul.f32 %v885_v54, %v1327_v44  ;;  %v526_v37 = vmul.f32 %v885_v54, %v1330_v45  ;;  %v446_v53 = vadd.f32 1e-06, %v414_v27  ;;  %v376_v57 = vpop.xlane.xlu1 %375  ;;  %v1773_v20 = vld [vmem:[#allocation13_spill] sm:$0xff]  ;;  %v1774_v54 = vld [vmem:[#allocation14_spill] sm:$0xff] }
 0x102   : > { %658 = vst [vmem:[%s1483_s30 + $0x100] sm:$0xff] %v594_v24  ;;  %659 = vst [vmem:[%s1483_s30 + $0x108] sm:$0xff] %v595_v48  ;;  %v523_v55 = vmul.f32 %v887_v32, %v1333_v46  ;;  %v524_v50 = vmul.f32 %v887_v32, %v1336_v47  ;;  %896 = vrsqrt.f32 %v447_v49  ;;  %v417_v51 = vmul.f32 0.00390625, %v376_v57  ;;  %v373_v7 = vpop.xlane.xlu0 %372  ;;  %v1775_v48 = vld [vmem:[#allocation15_spill] sm:$0xff] }
 0x103   : > { %v600_v8 = vmul.f32 %v1469_v23, %v525_v33  ;;  %v601_v44 = vmul.f32 %v1471_v52, %v526_v37  ;;  %898 = vrsqrt.f32 %v446_v53  ;;  %v416_v45 = vmul.f32 0.00390625, %v373_v7  ;;  %v1777_v7 = vld [vmem:[#allocation17_spill] sm:$0xff] }
 0x104   : > { %v889_v28 = vpop.eup %888  ;;  %v598_v29 = vmul.f32 %v1469_v23, %v523_v55  ;;  %v599_v36 = vmul.f32 %v1471_v52, %v524_v50  ;;  %v449_v6 = vadd.f32 1e-06, %v417_v51  ;;  %v1776_v50 = vld [vmem:[#allocation16_spill] sm:$0xff] }
 0x105   : > { %v891_v46 = vpop.eup %890  ;;  %664 = vst [vmem:[%s1483_s30 + $0x130] sm:$0xff] %v600_v8  ;;  %665 = vst [vmem:[%s1483_s30 + $0x138] sm:$0xff] %v601_v44  ;;  %v529_v47 = vmul.f32 %v889_v28, %v1347_v62  ;;  %v530_v56 = vmul.f32 %v889_v28, %v1350_v63  ;;  %v448_v9 = vadd.f32 1e-06, %v416_v45  ;;  %v382_v58 = vpop.xlane.xlu1 %381  ;;  %v1778_v44 = vld [vmem:[#allocation18_spill] sm:$0xff]  ;;  %v1779_v28 = vld [vmem:[#allocation19_spill] sm:$0xff] }
 0x106   : > { %662 = vst [vmem:[%s1483_s30 + $0x120] sm:$0xff] %v598_v29  ;;  %663 = vst [vmem:[%s1483_s30 + $0x128] sm:$0xff] %v599_v36  ;;  %v527_v59 = vmul.f32 %v891_v46, %v1353_v3  ;;  %v528_v30 = vmul.f32 %v891_v46, %v1356_v4  ;;  %900 = vrsqrt.f32 %v449_v6  ;;  %v419_v31 = vmul.f32 0.00390625, %v382_v58  ;;  %v379_v12 = vpop.xlane.xlu0 %378  ;;  %v1768_v4 = vld [vmem:[#allocation8_spill] sm:$0xff] }
 0x107   : > { %v604_v13 = vmul.f32 %v1469_v23, %v529_v47  ;;  %v605_v62 = vmul.f32 %v1471_v52, %v530_v56  ;;  %902 = vrsqrt.f32 %v448_v9  ;;  %v418_v63 = vmul.f32 0.00390625, %v379_v12  ;;  %v1780_v58 = vld [vmem:[#allocation20_spill] sm:$0xff]  ;;  %v1782_v12 = vld [vmem:[#allocation22_spill] sm:$0xff] }
 0x108   : > { %v893_v60 = vpop.eup %892  ;;  %v602_v61 = vmul.f32 %v1469_v23, %v527_v59  ;;  %v603_v17 = vmul.f32 %v1471_v52, %v528_v30  ;;  %v451_v25 = vadd.f32 1e-06, %v419_v31  ;;  %v1781_v30 = vld [vmem:[#allocation21_spill] sm:$0xff] }
 0x109   : > { %v895_v3 = vpop.eup %894  ;;  %668 = vst [vmem:[%s1483_s30 + $0x150] sm:$0xff] %v604_v13  ;;  %669 = vst [vmem:[%s1483_s30 + $0x158] sm:$0xff] %v605_v62  ;;  %v533_v34 = vmul.f32 %v893_v60, %v1768_v4  ;;  %v534_v22 = vmul.f32 %v893_v60, %v1769_v21  ;;  %v450_v0 = vadd.f32 1e-06, %v418_v63  ;;  %v388_v38 = vpop.xlane.xlu1 %387  ;;  %v1783_v62 = vld [vmem:[#allocation23_spill] sm:$0xff] }
 0x10a   : > { %666 = vst [vmem:[%s1483_s30 + $0x140] sm:$0xff] %v602_v61  ;;  %667 = vst [vmem:[%s1483_s30 + $0x148] sm:$0xff] %v603_v17  ;;  %v531_v10 = vmul.f32 %v895_v3, %v1770_v39  ;;  %v532_v1 = vmul.f32 %v895_v3, %v1771_v11  ;;  %904 = vrsqrt.f32 %v451_v25  ;;  %v421_v35 = vmul.f32 0.00390625, %v388_v38  ;;  %v385_v14 = vpop.xlane.xlu0 %384  ;;  %v1786_v38 = vld [vmem:[#allocation26_spill] sm:$0xff] }
 0x10b   : > { %v608_v18 = vmul.f32 %v1469_v23, %v533_v34  ;;  %v609_v15 = vmul.f32 %v1471_v52, %v534_v22  ;;  %906 = vrsqrt.f32 %v450_v0  ;;  %v420_v16 = vmul.f32 0.00390625, %v385_v14  ;;  %v1784_v34 = vld [vmem:[#allocation24_spill] sm:$0xff]  ;;  %v1785_v22 = vld [vmem:[#allocation25_spill] sm:$0xff] }
 0x10c   : > { %v897_v40 = vpop.eup %896  ;;  %v606_v41 = vmul.f32 %v1469_v23, %v531_v10  ;;  %v607_v43 = vmul.f32 %v1471_v52, %v532_v1  ;;  %v453_v2 = vadd.f32 1e-06, %v421_v35  ;;  %v1787_v10 = vld [vmem:[#allocation27_spill] sm:$0xff] }
 0x10d   : > { %v899_v5 = vpop.eup %898  ;;  %672 = vst [vmem:[%s1483_s30 + $0x170] sm:$0xff] %v608_v18  ;;  %673 = vst [vmem:[%s1483_s30 + $0x178] sm:$0xff] %v609_v15  ;;  %v537_v19 = vmul.f32 %v897_v40, %v1772_v42  ;;  %v538_v26 = vmul.f32 %v897_v40, %v1773_v20  ;;  %v452_v27 = vadd.f32 1e-06, %v420_v16 }
 0x10e   : > { %670 = vst [vmem:[%s1483_s30 + $0x160] sm:$0xff] %v606_v41  ;;  %671 = vst [vmem:[%s1483_s30 + $0x168] sm:$0xff] %v607_v43  ;;  %v535_v24 = vmul.f32 %v899_v5, %v1774_v54  ;;  %v536_v49 = vmul.f32 %v899_v5, %v1775_v48  ;;  %908 = vrsqrt.f32 %v453_v2 }
 0x10f   : > { %v612_v32 = vmul.f32 %v1469_v23, %v537_v19  ;;  %v613_v33 = vmul.f32 %v1471_v52, %v538_v26  ;;  %910 = vrsqrt.f32 %v452_v27 }
 0x110   : > { %v901_v37 = vpop.eup %900  ;;  %v610_v53 = vmul.f32 %v1469_v23, %v535_v24  ;;  %v611_v57 = vmul.f32 %v1471_v52, %v536_v49 }
 0x111   : > { %v903_v55 = vpop.eup %902  ;;  %676 = vst [vmem:[%s1483_s30 + $0x190] sm:$0xff] %v612_v32  ;;  %677 = vst [vmem:[%s1483_s30 + $0x198] sm:$0xff] %v613_v33  ;;  %v541_v51 = vmul.f32 %v901_v37, %v1776_v50  ;;  %v542_v8 = vmul.f32 %v901_v37, %v1777_v7 }
 0x112   : > { %674 = vst [vmem:[%s1483_s30 + $0x180] sm:$0xff] %v610_v53  ;;  %675 = vst [vmem:[%s1483_s30 + $0x188] sm:$0xff] %v611_v57  ;;  %v539_v45 = vmul.f32 %v903_v55, %v1778_v44  ;;  %v540_v29 = vmul.f32 %v903_v55, %v1779_v28 }
 0x113   : > { %v616_v36 = vmul.f32 %v1469_v23, %v541_v51  ;;  %v617_v6 = vmul.f32 %v1471_v52, %v542_v8 }
 0x114   : > { %v905_v46 = vpop.eup %904  ;;  %v614_v47 = vmul.f32 %v1469_v23, %v539_v45  ;;  %v615_v56 = vmul.f32 %v1471_v52, %v540_v29 }
 0x115   : > { %v907_v9 = vpop.eup %906  ;;  %680 = vst [vmem:[%s1483_s30 + $0x1b0] sm:$0xff] %v616_v36  ;;  %681 = vst [vmem:[%s1483_s30 + $0x1b8] sm:$0xff] %v617_v6  ;;  %v545_v59 = vmul.f32 %v905_v46, %v1780_v58  ;;  %v546_v31 = vmul.f32 %v905_v46, %v1781_v30 }
 0x116   : > { %678 = vst [vmem:[%s1483_s30 + $0x1a0] sm:$0xff] %v614_v47  ;;  %679 = vst [vmem:[%s1483_s30 + $0x1a8] sm:$0xff] %v615_v56  ;;  %v543_v13 = vmul.f32 %v907_v9, %v1782_v12  ;;  %v544_v63 = vmul.f32 %v907_v9, %v1783_v62 }
 0x117   : > { %v620_v60 = vmul.f32 %v1469_v23, %v545_v59  ;;  %v621_v61 = vmul.f32 %v1471_v52, %v546_v31 }
 0x118   : > { %v909_v17 = vpop.eup %908  ;;  %v618_v25 = vmul.f32 %v1469_v23, %v543_v13  ;;  %v619_v3 = vmul.f32 %v1471_v52, %v544_v63 }
 0x119   : > { %v911_v4 = vpop.eup %910  ;;  %684 = vst [vmem:[%s1483_s30 + $0x1d0] sm:$0xff] %v620_v60  ;;  %685 = vst [vmem:[%s1483_s30 + $0x1d8] sm:$0xff] %v621_v61  ;;  %v549_v21 = vmul.f32 %v909_v17, %v1784_v34  ;;  %v550_v0 = vmul.f32 %v909_v17, %v1785_v22 }
 0x11a   : > { %682 = vst [vmem:[%s1483_s30 + $0x1c0] sm:$0xff] %v618_v25  ;;  %683 = vst [vmem:[%s1483_s30 + $0x1c8] sm:$0xff] %v619_v3  ;;  %v547_v39 = vmul.f32 %v911_v4, %v1786_v38  ;;  %v548_v11 = vmul.f32 %v911_v4, %v1787_v10 }
 0x11b   : > { %v624_v1 = vmul.f32 %v1469_v23, %v549_v21  ;;  %v625_v35 = vmul.f32 %v1471_v52, %v550_v0 }
 0x11c   : > { %v622_v14 = vmul.f32 %v1469_v23, %v547_v39  ;;  %v623_v18 = vmul.f32 %v1471_v52, %v548_v11 }
 0x11d   : > { %688 = vst [vmem:[%s1483_s30 + $0x1f0] sm:$0xff] %v624_v1  ;;  %689 = vst [vmem:[%s1483_s30 + $0x1f8] sm:$0xff] %v625_v35 }
 0x11e   : > { %686 = vst [vmem:[%s1483_s30 + $0x1e0] sm:$0xff] %v622_v14  ;;  %687 = vst [vmem:[%s1483_s30 + $0x1e8] sm:$0xff] %v623_v18 }
 0x11f   : > { %955 = shalt.err (!%p952_p1)
}
 0x120   : > { %s956_s24 = scalar_lea.hbm %s1668_s8, 8192  ;;  %s960_s29 = scalar_lea.hbm %s1721_s2, 24576 }
 0x121   : > { %p957_p3 = scmp.ne.s32.totalorder %s1668_s8, %s956_s24  ;;  %p961_p0 = scmp.lt.u32.totalorder %s1668_s8, %s1721_s2 }
 0x122   : > { %p962_p2 = scmp.lt.u32.totalorder %s960_s29, %s956_s24  ;;  %p964_p6 = scmp.lt.u32.totalorder %s956_s24, %s1668_s8 }
 0x123   : > { %p958_p4 = pnand %p957_p3, %p1788_p10 }
 0x124   : > { %p963_p7 = por %p962_p2, %p961_p0 }
 0x125   : > { %p959_p5 = pneg %p958_p4 }
 0x126   : > { %p965_p11 = por %p964_p6, %p963_p7 }
 0x128   : > { %p966_p12 = pnand %p965_p11, %p959_p5 }
 0x12a   : > { %969 = shalt.err (!%p966_p12)
}
 0x12b   : > { %s1014_s20 = smov 256   ;;  %s1015_s28 = smov 16  }
 0x12c   : > { %800 = dma.vmem_to_hbm [thread:$0]  (%p1788_p10), %s1670_s4, 8192, %s1668_s8, %s691_s14, %s1014_s20, %s1014_s20, %s1015_s28  }
 0x12d PF: > { %p811_p8 = scmp.ge.s32.totalorder %s1008_s12, 2  ;;  %s720_s30 = sand.u32 1, %s996_s9  }
 0x12e   : > { %p1789_p9 = scmp.ne.s32.totalorder %s1746_s22, 0  ;;  %s721_s3 = scalar_lea.sflag [#allocation4], %s720_s30 }
 0x130   : > { %p807_p13 = pnand %p811_p8, %p1789_p9 }
 0x132   : > { %991 = dma.done.wait (!%p807_p13), %s721_s3, 8192  }
 0x133   : > { %993 = vsyncadd (!%p807_p13), %s721_s3, 4294959104  ;;  %p15_p1 = scmp.ge.s32.totalorder %s1056_s15, 5   ;;  %s1790_s9 = smov %s1000_s10 }
 0x134   : > { %s1791_s10 = smov %s1004_s11  ;;  %s1792_s11 = smov %s1068_s18 }
 0x135   : > { %s1793_s12 = smov %s1056_s15  ;;  %17 = sbr.rel (!%p15_p1) target bundleno = 5 (0x5), region = 73 }
 0x13c   :  { %726 = vsyncpa [#allocation3], 1 }
 0x13d   :  { %728 = vsyncpa [#allocation3 + $0x1], 1 }
 0x13e   :  { %729 = vsyncpa [#allocation4], 1 }
 0x13f   :  { %731 = vsyncpa [#allocation4 + $0x1], 1 }

</bundles_post_ra>
